<compile_context>
chip_gen: v6e
topology: v6e:2x2x1
jax: 0.10.0
libtpu: 0.0.40
codegen_flags: <defaults>
</compile_context>

<pallas_src>
import jax
import jax.numpy as jnp
from jax.experimental import pallas as pl
from jax.experimental.pallas import tpu as pltpu

INPUT_SIZE = 784
HIDDEN_SIZE = 26
NUM_CLASSES = 10

# 1024-row f32 tiles (double-buffered x ~6.4 MB + weights + output) fit the
# default scoped VMEM limit on all of v5e (16 MiB) / v6e (32 MiB) / v7x (32 MiB).
MAX_TILE_B = 1024
# Below this many rows, splitting into 2 grid steps costs more in per-step
# overhead than the second TensorCore can win back.
MIN_SPLIT_ROWS = 512


def _round_up(n, m):
    return ((n + m - 1) // m) * m


def _choose_tile_b(batch, sublane):
    """Balanced batch tiles: minimize boundary-tile waste, prefer >=2 steps."""
    n_tiles = pl.cdiv(batch, MAX_TILE_B)
    if n_tiles < 2 and batch >= 2 * MIN_SPLIT_ROWS:
        n_tiles = 2  # let ("parallel",) shard across both TCs on v7x
    tile_b = _round_up(pl.cdiv(batch, n_tiles), sublane)
    return min(MAX_TILE_B, tile_b)


def _mlp_kernel(x_ref, w1_ref, b1_ref, w2_ref, b2_ref, o_ref):
    # out1 = sigmoid(x @ W1 + b1): MXU matmul with f32 accumulation, exp on EUP.
    h = jnp.dot(x_ref[...], w1_ref[...], preferred_element_type=jnp.float32)
    h = jax.nn.sigmoid(h + b1_ref[...])          # b1 is (1, H), broadcasts over rows
    # out2 = out1 @ W2 + b2 (second matmul kept in f32).
    out = jnp.dot(h, w2_ref[...].astype(jnp.float32),
                  preferred_element_type=jnp.float32)
    o_ref[...] = (out + b2_ref[...]).astype(o_ref.dtype)


@jax.jit
def logistic_regression_forward(x, w1, b1, w2, b2):
    """Pallas TPU forward of LogisticRegression (Linear -> sigmoid -> Linear).

    x: [B, 784]; w1: [784, 26]; b1: [1, 26]; w2: [26, 10]; b2: [1, 10].
    x is streamed in its own dtype (pass bf16 x to halve the dominant HBM read
    traffic); only w1 is cast to match it. Accumulation is f32 in-kernel.
    """
    batch, feat = x.shape
    assert feat == INPUT_SIZE
    out_dtype = x.dtype

    # Match the first-matmul weight dtype to x (81 KB, negligible); x itself is
    # NOT cast in the wrapper — that would be a full extra HBM pass over x.
    w1 = w1.astype(x.dtype)

    sublane = 16 if x.dtype == jnp.bfloat16 else 8
    tile_b = _choose_tile_b(batch, sublane)
    grid = (pl.cdiv(batch, tile_b),)

    x_item = jnp.dtype(x.dtype).itemsize
    out_item = jnp.dtype(out_dtype).itemsize
    weight_bytes = (w1.size * jnp.dtype(w1.dtype).itemsize
                    + b1.size * jnp.dtype(b1.dtype).itemsize
                    + w2.size * jnp.dtype(w2.dtype).itemsize
                    + b2.size * jnp.dtype(b2.dtype).itemsize)
    cost = pl.CostEstimate(
        flops=2 * batch * (INPUT_SIZE * HIDDEN_SIZE + HIDDEN_SIZE * NUM_CLASSES),
        transcendentals=batch * HIDDEN_SIZE,
        bytes_accessed=(batch * INPUT_SIZE * x_item
                        + batch * NUM_CLASSES * out_item
                        + weight_bytes),
    )

    return pl.pallas_call(
        _mlp_kernel,
        out_shape=jax.ShapeDtypeStruct((batch, NUM_CLASSES), out_dtype),
        grid=grid,
        in_specs=[
            # x: one batch tile per grid step (double-buffered by Pallas).
            pl.BlockSpec((tile_b, INPUT_SIZE), lambda i: (i, 0)),
            # Weights / biases: same block every step -> stay VMEM-resident.
            pl.BlockSpec((INPUT_SIZE, HIDDEN_SIZE), lambda i: (0, 0)),
            pl.BlockSpec((1, HIDDEN_SIZE), lambda i: (0, 0)),
            pl.BlockSpec((HIDDEN_SIZE, NUM_CLASSES), lambda i: (0, 0)),
            pl.BlockSpec((1, NUM_CLASSES), lambda i: (0, 0)),
        ],
        # Output last dim stays at 10: write traffic is ~1% of read traffic.
        out_specs=pl.BlockSpec((tile_b, NUM_CLASSES), lambda i: (i, 0)),
        compiler_params=pltpu.CompilerParams(
            dimension_semantics=("parallel",),
        ),
        cost_estimate=cost,
    )(x, w1, b1, w2, b2)


def init_params(key):
    """Deterministic init mimicking nn.Linear's U(-1/sqrt(fan_in), 1/sqrt(fan_in))."""
    k1, k2, k3, k4 = jax.random.split(key, 4)
    bound1 = 1.0 / jnp.sqrt(INPUT_SIZE)
    bound2 = 1.0 / jnp.sqrt(HIDDEN_SIZE)
    w1 = jax.random.uniform(k1, (INPUT_SIZE, HIDDEN_SIZE), jnp.float32, -bound1, bound1)
    b1 = jax.random.uniform(k2, (1, HIDDEN_SIZE), jnp.float32, -bound1, bound1)
    w2 = jax.random.uniform(k3, (HIDDEN_SIZE, NUM_CLASSES), jnp.float32, -bound2, bound2)
    b2 = jax.random.uniform(k4, (1, NUM_CLASSES), jnp.float32, -bound2, bound2)
    return w1, b1, w2, b2


if __name__ == "__main__":
    key = jax.random.PRNGKey(0)
    kx, kp = jax.random.split(key)
    w1, b1, w2, b2 = init_params(kp)

    # Small correctness check (single partial tile: batch=8 < tile_b).
    batch = 8
    x = jax.random.normal(kx, (batch, INPUT_SIZE), dtype=jnp.float32)
    out = logistic_regression_forward(x, w1, b1, w2, b2)
    jax.block_until_ready(out)
    ref = jax.nn.sigmoid(x @ w1 + b1) @ w2 + b2
    assert out.shape == (batch, NUM_CLASSES)
    assert jnp.allclose(out, ref, atol=1e-5, rtol=1e-5)

    # Multi-tile, non-divisible batch: exercises the masked boundary tile and
    # the balanced >=2-step grid path (1543 -> 2 tiles of 776).
    big_b = 1543
    xb = jax.random.normal(kx, (big_b, INPUT_SIZE), dtype=jnp.float32)
    out_big = logistic_regression_forward(xb, w1, b1, w2, b2)
    jax.block_until_ready(out_big)
    ref_big = jax.nn.sigmoid(xb @ w1 + b1) @ w2 + b2
    assert out_big.shape == (big_b, NUM_CLASSES)
    assert jnp.allclose(out_big, ref_big, atol=1e-5, rtol=1e-5)

    print("KERNEL_OK")
</pallas_src>

<mosaic_0001>
module attributes {stable_mosaic.version = 11 : i64} {
  func.func @_mlp_kernel(%arg0: i32, %arg1: memref<8x784xf32, #tpu.memory_space<vmem>>, %arg2: memref<784x26xf32, #tpu.memory_space<vmem>>, %arg3: memref<1x26xf32, #tpu.memory_space<vmem>>, %arg4: memref<26x10xf32, #tpu.memory_space<vmem>>, %arg5: memref<1x10xf32, #tpu.memory_space<vmem>>, %arg6: memref<8x10xf32, #tpu.memory_space<vmem>>) attributes {dimension_semantics = [#tpu.dimension_semantics<parallel>], iteration_bounds = array<i64: 1>, scalar_prefetch = 0 : i64, scratch_operands = 0 : i64, tpu.core_type = #tpu.core_type<tc>, window_params = [{transform_indices = @transform_0, window_bounds = array<i64: 8, 784>}, {pipeline_mode = #tpu.pipeline_mode<synchronous>, transform_indices = @transform_1, window_bounds = array<i64: 784, 26>}, {pipeline_mode = #tpu.pipeline_mode<synchronous>, transform_indices = @transform_2, window_bounds = array<i64: 1, 26>}, {pipeline_mode = #tpu.pipeline_mode<synchronous>, transform_indices = @transform_3, window_bounds = array<i64: 26, 10>}, {pipeline_mode = #tpu.pipeline_mode<synchronous>, transform_indices = @transform_4, window_bounds = array<i64: 1, 10>}, {transform_indices = @transform_5, window_bounds = array<i64: 8, 10>}]} {
    %c0 = arith.constant 0 : index
    %c0_0 = arith.constant 0 : index
    %0 = vector.load %arg1[%c0, %c0_0] : memref<8x784xf32, #tpu.memory_space<vmem>>, vector<8x784xf32>
    %c0_1 = arith.constant 0 : index
    %c0_2 = arith.constant 0 : index
    %1 = vector.load %arg2[%c0_1, %c0_2] : memref<784x26xf32, #tpu.memory_space<vmem>>, vector<784x26xf32>
    %cst = arith.constant dense<0.000000e+00> : vector<8x26xf32>
    %2 = tpu.matmul %0, %1, %cst {dimension_numbers = #tpu.dot_dimension_numbers<[1], [0], [0], [1], [0, 0, 1, 1], [], []>} : vector<8x784xf32>, vector<784x26xf32>, vector<8x26xf32> -> vector<8x26xf32>
    %c0_3 = arith.constant 0 : index
    %c0_4 = arith.constant 0 : index
    %3 = vector.load %arg3[%c0_3, %c0_4] : memref<1x26xf32, #tpu.memory_space<vmem>>, vector<1x26xf32>
    %4 = vector.broadcast %3 : vector<1x26xf32> to vector<8x26xf32>
    %5 = arith.addf %2, %4 : vector<8x26xf32>
    %6 = arith.negf %5 : vector<8x26xf32>
    %7 = math.exp %6 : vector<8x26xf32>
    %cst_5 = arith.constant 1.000000e+00 : f32
    %8 = vector.broadcast %cst_5 : f32 to vector<8x26xf32>
    %9 = arith.addf %8, %7 : vector<8x26xf32>
    %10 = arith.divf %8, %9 : vector<8x26xf32>
    %c0_6 = arith.constant 0 : index
    %c0_7 = arith.constant 0 : index
    %11 = vector.load %arg4[%c0_6, %c0_7] : memref<26x10xf32, #tpu.memory_space<vmem>>, vector<26x10xf32>
    %cst_8 = arith.constant dense<0.000000e+00> : vector<8x10xf32>
    %12 = tpu.matmul %10, %11, %cst_8 {dimension_numbers = #tpu.dot_dimension_numbers<[1], [0], [0], [1], [0, 0, 1, 1], [], []>} : vector<8x26xf32>, vector<26x10xf32>, vector<8x10xf32> -> vector<8x10xf32>
    %c0_9 = arith.constant 0 : index
    %c0_10 = arith.constant 0 : index
    %13 = vector.load %arg5[%c0_9, %c0_10] : memref<1x10xf32, #tpu.memory_space<vmem>>, vector<1x10xf32>
    %14 = vector.broadcast %13 : vector<1x10xf32> to vector<8x10xf32>
    %15 = arith.addf %12, %14 : vector<8x10xf32>
    %c0_11 = arith.constant 0 : index
    %c0_12 = arith.constant 0 : index
    %16 = vector.load %arg6[%c0_11, %c0_12] : memref<8x10xf32, #tpu.memory_space<vmem>>, vector<8x10xf32>
    tpu.vector_store %arg6[%c0_11, %c0_12], %15 {strides = array<i32>} : memref<8x10xf32, #tpu.memory_space<vmem>>, vector<8x10xf32>,
    return
  }
  func.func @transform_0(%arg0: i32) -> (i32, i32) {
    %c0_i32 = arith.constant 0 : i32
    %c0_i32_0 = arith.constant 0 : i32
    return %arg0, %c0_i32 : i32, i32
  }
  func.func @transform_1(%arg0: i32) -> (i32, i32) {
    %c0_i32 = arith.constant 0 : i32
    %c0_i32_0 = arith.constant 0 : i32
    %c0_i32_1 = arith.constant 0 : i32
    return %c0_i32, %c0_i32_0 : i32, i32
  }
  func.func @transform_2(%arg0: i32) -> (i32, i32) {
    %c0_i32 = arith.constant 0 : i32
    %c0_i32_0 = arith.constant 0 : i32
    %c0_i32_1 = arith.constant 0 : i32
    return %c0_i32, %c0_i32_0 : i32, i32
  }
  func.func @transform_3(%arg0: i32) -> (i32, i32) {
    %c0_i32 = arith.constant 0 : i32
    %c0_i32_0 = arith.constant 0 : i32
    %c0_i32_1 = arith.constant 0 : i32
    return %c0_i32, %c0_i32_0 : i32, i32
  }
  func.func @transform_4(%arg0: i32) -> (i32, i32) {
    %c0_i32 = arith.constant 0 : i32
    %c0_i32_0 = arith.constant 0 : i32
    %c0_i32_1 = arith.constant 0 : i32
    return %c0_i32, %c0_i32_0 : i32, i32
  }
  func.func @transform_5(%arg0: i32) -> (i32, i32) {
    %c0_i32 = arith.constant 0 : i32
    %c0_i32_0 = arith.constant 0 : i32
    return %arg0, %c0_i32 : i32, i32
  }
}

</mosaic_0001>

<bundles_post_ra>
// kernel: logistic_regression_forward.1
= control target key start
LH: loop header
LB: loop body
LE: loop exit
PB: predicated region body
PF: predicated region fallthrough
CT: control target
= control target key end

     0   :  { %s1071_s0 = inlined_call_operand.vmem [shape: f32[8,784], index: 0, kind: input, shape index: {}]   ;;  %s1072_s1 = inlined_call_operand.vmem [shape: f32[784,26], index: 1, kind: input, shape index: {}]   ;;  %s1073_s2 = inlined_call_operand.vmem [shape: f32[1,26], index: 2, kind: input, shape index: {}]   ;;  %s1074_s3 = inlined_call_operand.vmem [shape: f32[26,10], index: 3, kind: input, shape index: {}]   ;;  %s1075_s4 = inlined_call_operand.vmem [shape: f32[1,10], index: 4, kind: input, shape index: {}]   ;;  %s1076_s5 = inlined_call_operand.hbm [shape: f32[8,10], index: 5, kind: output, shape index: {}]  }
   0x1   :  { %v59_v0 = vld [vmem:[%s1072_s1 + $0xf8] sm:$0xff]  ;;  %v58_v2 = vld [vmem:[%s1072_s1 + $0xf0] sm:$0xff]  ;;  %v57_v6 = vld [vmem:[%s1072_s1 + $0xe8] sm:$0xff] }
   0x2   :  { %v43_v1 = vld [vmem:[%s1072_s1 + $0x78] sm:$0xff]  ;;  %534 = vmatprep.subr.mxu0 %v59_v0  ;;  %v42_v4 = vld [vmem:[%s1072_s1 + $0x70] sm:$0xff]  ;;  %v41_v8 = vld [vmem:[%s1072_s1 + $0x68] sm:$0xff] }
   0x3   :  { %v91_v3 = vld [vmem:[%s1072_s1 + $0x1f8] sm:$0xff]  ;;  %535 = vmatpush3.msra.mxu0 %v43_v1  ;;  %v90_v7 = vld [vmem:[%s1072_s1 + $0x1f0] sm:$0xff]  ;;  %v89_v10 = vld [vmem:[%s1072_s1 + $0x1e8] sm:$0xff] }
   0x4   :  { %v75_v5 = vld [vmem:[%s1072_s1 + $0x178] sm:$0xff]  ;;  %569 = vmatprep.subr.mxu1 %v91_v3  ;;  %536 = vmatprep.subr.mxu0 %v58_v2  ;;  %v74_v9 = vld [vmem:[%s1072_s1 + $0x170] sm:$0xff]  ;;  %v56_v11 = vld [vmem:[%s1072_s1 + $0xe0] sm:$0xff] }
   0x5   :  { %570 = vmatpush3.msra.mxu1 %v75_v5  ;;  %537 = vmatpush3.msra.mxu0 %v42_v4  ;;  %v73_v12 = vld [vmem:[%s1072_s1 + $0x168] sm:$0xff]  ;;  %v40_v13 = vld [vmem:[%s1072_s1 + $0x60] sm:$0xff]  ;;  %v55_v15 = vld [vmem:[%s1072_s1 + $0xd8] sm:$0xff] }
   0x6   :  { %571 = vmatprep.subr.mxu1 %v90_v7  ;;  %538 = vmatprep.subr.mxu0 %v57_v6  ;;  %v88_v14 = vld [vmem:[%s1072_s1 + $0x1e0] sm:$0xff]  ;;  %v39_v17 = vld [vmem:[%s1072_s1 + $0x58] sm:$0xff]  ;;  %v54_v19 = vld [vmem:[%s1072_s1 + $0xd0] sm:$0xff] }
   0x7   :  { %572 = vmatpush3.msra.mxu1 %v74_v9  ;;  %539 = vmatpush3.msra.mxu0 %v41_v8  ;;  %v72_v16 = vld [vmem:[%s1072_s1 + $0x160] sm:$0xff]  ;;  %v87_v18 = vld [vmem:[%s1072_s1 + $0x1d8] sm:$0xff]  ;;  %v38_v21 = vld [vmem:[%s1072_s1 + $0x50] sm:$0xff] }
   0x8   :  { %573 = vmatprep.subr.mxu1 %v89_v10  ;;  %540 = vmatprep.subr.mxu0 %v56_v11  ;;  %v71_v20 = vld [vmem:[%s1072_s1 + $0x158] sm:$0xff]  ;;  %v86_v22 = vld [vmem:[%s1072_s1 + $0x1d0] sm:$0xff]  ;;  %v53_v23 = vld [vmem:[%s1072_s1 + $0xc8] sm:$0xff] }
   0x9   :  { %574 = vmatpush3.msra.mxu1 %v73_v12  ;;  %541 = vmatpush3.msra.mxu0 %v40_v13  ;;  %v70_v24 = vld [vmem:[%s1072_s1 + $0x150] sm:$0xff]  ;;  %v37_v25 = vld [vmem:[%s1072_s1 + $0x48] sm:$0xff]  ;;  %v52_v27 = vld [vmem:[%s1072_s1 + $0xc0] sm:$0xff] }
   0xa   :  { %575 = vmatprep.subr.mxu1 %v88_v14  ;;  %542 = vmatprep.subr.mxu0 %v55_v15  ;;  %v85_v26 = vld [vmem:[%s1072_s1 + $0x1c8] sm:$0xff]  ;;  %v36_v29 = vld [vmem:[%s1072_s1 + $0x40] sm:$0xff]  ;;  %v51_v31 = vld [vmem:[%s1072_s1 + $0xb8] sm:$0xff] }
   0xb   :  { %576 = vmatpush3.msra.mxu1 %v72_v16  ;;  %543 = vmatpush3.msra.mxu0 %v39_v17  ;;  %v69_v28 = vld [vmem:[%s1072_s1 + $0x148] sm:$0xff]  ;;  %v84_v30 = vld [vmem:[%s1072_s1 + $0x1c0] sm:$0xff]  ;;  %v35_v33 = vld [vmem:[%s1072_s1 + $0x38] sm:$0xff] }
   0xc   :  { %577 = vmatprep.subr.mxu1 %v87_v18  ;;  %544 = vmatprep.subr.mxu0 %v54_v19  ;;  %v68_v32 = vld [vmem:[%s1072_s1 + $0x140] sm:$0xff]  ;;  %v83_v34 = vld [vmem:[%s1072_s1 + $0x1b8] sm:$0xff]  ;;  %v50_v35 = vld [vmem:[%s1072_s1 + $0xb0] sm:$0xff] }
   0xd   :  { %578 = vmatpush3.msra.mxu1 %v71_v20  ;;  %545 = vmatpush3.msra.mxu0 %v38_v21  ;;  %v67_v36 = vld [vmem:[%s1072_s1 + $0x138] sm:$0xff]  ;;  %v34_v37 = vld [vmem:[%s1072_s1 + $0x30] sm:$0xff]  ;;  %v49_v39 = vld [vmem:[%s1072_s1 + $0xa8] sm:$0xff] }
   0xe   :  { %579 = vmatprep.subr.mxu1 %v86_v22  ;;  %546 = vmatprep.subr.mxu0 %v53_v23  ;;  %v82_v38 = vld [vmem:[%s1072_s1 + $0x1b0] sm:$0xff]  ;;  %v33_v41 = vld [vmem:[%s1072_s1 + $0x28] sm:$0xff]  ;;  %v48_v43 = vld [vmem:[%s1072_s1 + $0xa0] sm:$0xff] }
   0xf   :  { %580 = vmatpush3.msra.mxu1 %v70_v24  ;;  %547 = vmatpush3.msra.mxu0 %v37_v25  ;;  %v66_v40 = vld [vmem:[%s1072_s1 + $0x130] sm:$0xff]  ;;  %v81_v42 = vld [vmem:[%s1072_s1 + $0x1a8] sm:$0xff]  ;;  %v32_v45 = vld [vmem:[%s1072_s1 + $0x20] sm:$0xff] }
  0x10   :  { %581 = vmatprep.subr.mxu1 %v85_v26  ;;  %548 = vmatprep.subr.mxu0 %v52_v27  ;;  %v65_v44 = vld [vmem:[%s1072_s1 + $0x128] sm:$0xff]  ;;  %v80_v46 = vld [vmem:[%s1072_s1 + $0x1a0] sm:$0xff]  ;;  %v47_v47 = vld [vmem:[%s1072_s1 + $0x98] sm:$0xff] }
  0x11   :  { %582 = vmatpush3.msra.mxu1 %v69_v28  ;;  %549 = vmatpush3.msra.mxu0 %v36_v29  ;;  %v64_v48 = vld [vmem:[%s1072_s1 + $0x120] sm:$0xff]  ;;  %v31_v49 = vld [vmem:[%s1072_s1 + $0x18] sm:$0xff]  ;;  %v46_v51 = vld [vmem:[%s1072_s1 + $0x90] sm:$0xff] }
  0x12   :  { %583 = vmatprep.subr.mxu1 %v84_v30  ;;  %550 = vmatprep.subr.mxu0 %v51_v31  ;;  %v79_v50 = vld [vmem:[%s1072_s1 + $0x198] sm:$0xff]  ;;  %v30_v53 = vld [vmem:[%s1072_s1 + $0x10] sm:$0xff]  ;;  %v45_v55 = vld [vmem:[%s1072_s1 + $0x88] sm:$0xff] }
  0x13   :  { %584 = vmatpush3.msra.mxu1 %v68_v32  ;;  %551 = vmatpush3.msra.mxu0 %v35_v33  ;;  %v63_v52 = vld [vmem:[%s1072_s1 + $0x118] sm:$0xff]  ;;  %v78_v54 = vld [vmem:[%s1072_s1 + $0x190] sm:$0xff]  ;;  %v29_v57 = vld [vmem:[%s1072_s1 + $0x8] sm:$0xff] }
  0x14   :  { %585 = vmatprep.subr.mxu1 %v83_v34  ;;  %552 = vmatprep.subr.mxu0 %v50_v35  ;;  %v62_v56 = vld [vmem:[%s1072_s1 + $0x110] sm:$0xff]  ;;  %v77_v58 = vld [vmem:[%s1072_s1 + $0x188] sm:$0xff]  ;;  %v44_v59 = vld [vmem:[%s1072_s1 + $0x80] sm:$0xff] }
  0x15   :  { %586 = vmatpush3.msra.mxu1 %v67_v36  ;;  %553 = vmatpush3.msra.mxu0 %v34_v37  ;;  %v22_v60 = vld [vmem:[%s1071_s0 + $0x8] sm:$0xff]  ;;  %v28_v61 = vld [vmem:[%s1072_s1] sm:$0xff]  ;;  %v123_v1 = vld [vmem:[%s1072_s1 + $0x2f8] sm:$0xff] }
  0x16   :  { %587 = vmatprep.subr.mxu1 %v82_v38  ;;  %554 = vmatprep.subr.mxu0 %v49_v39  ;;  %v61_v62 = vld [vmem:[%s1072_s1 + $0x108] sm:$0xff]  ;;  %v21_v63 = vld [vmem:[%s1071_s0] sm:$0xff]  ;;  %v24_v3 = vld [vmem:[%s1071_s0 + $0x18] sm:$0xff] }
  0x17   :  { %588 = vmatpush3.msra.mxu1 %v66_v40  ;;  %555 = vmatpush3.msra.mxu0 %v33_v41  ;;  %v76_v0 = vld [vmem:[%s1072_s1 + $0x180] sm:$0xff]  ;;  %v107_v4 = vld [vmem:[%s1072_s1 + $0x278] sm:$0xff]  ;;  %v23_v5 = vld [vmem:[%s1071_s0 + $0x10] sm:$0xff] }
  0x18   :  { %589 = vmatprep.subr.mxu1 %v81_v42  ;;  %556 = vmatprep.subr.mxu0 %v48_v43  ;;  %v60_v2 = vld [vmem:[%s1072_s1 + $0x100] sm:$0xff]  ;;  %v122_v6 = vld [vmem:[%s1072_s1 + $0x2f0] sm:$0xff]  ;;  %v26_v8 = vld [vmem:[%s1071_s0 + $0x28] sm:$0xff] }
  0x19   :  { %590 = vmatpush3.msra.mxu1 %v65_v44  ;;  %557 = vmatpush3.msra.mxu0 %v32_v45  ;;  %v106_v7 = vld [vmem:[%s1072_s1 + $0x270] sm:$0xff]  ;;  %v121_v9 = vld [vmem:[%s1072_s1 + $0x2e8] sm:$0xff] }
  0x1a   :  { %591 = vmatprep.subr.mxu1 %v80_v46  ;;  %558 = vmatprep.subr.mxu0 %v47_v47 }
  0x1b   :  { %592 = vmatpush3.msra.mxu1 %v64_v48  ;;  %559 = vmatpush3.msra.mxu0 %v31_v49 }
  0x1c   :  { %593 = vmatprep.subr.mxu1 %v79_v50  ;;  %560 = vmatprep.subr.mxu0 %v46_v51 }
  0x1d   :  { %594 = vmatpush3.msra.mxu1 %v63_v52  ;;  %561 = vmatpush3.msra.mxu0 %v30_v53 }
  0x1e   :  { %595 = vmatprep.subr.mxu1 %v78_v54  ;;  %562 = vmatprep.subr.mxu0 %v45_v55 }
  0x1f   :  { %596 = vmatpush3.msra.mxu1 %v62_v56  ;;  %563 = vmatpush3.msra.mxu0 %v29_v57 }
  0x20   :  { %597 = vmatprep.subr.mxu1 %v77_v58  ;;  %564 = vmatprep.subr.mxu0 %v44_v59 }
  0x21   :  { %201 = vmatprep.mubr.f32.mxu0 %v22_v60  ;;  %565 = vmatpush3.msra.mxu0 %v28_v61 }
  0x22   :  { %598 = vmatpush3.msra.mxu1 %v61_v62  ;;  %202 = vmatmul.mubr.f32.vlgmr.msra.gmra.mxu0 %v21_v63 }
  0x23   :  { %599 = vmatprep.subr.mxu1 %v76_v0  ;;  %604 = vmatprep.subr.mxu0 %v123_v1 }
  0x24   :  { %600 = vmatpush3.msra.mxu1 %v60_v2  ;;  %271 = vmatprep.mubr.f32.mxu1 %v24_v3 }
  0x25   :  { %605 = vmatpush3.msra.mxu0 %v107_v4 }
  0x26   :  { %10 = vsyncpa [#allocation3], 0  ;;  %272 = vmatmul.mubr.f32.vlgmr.msra.gmra.mxu1 %v23_v5  ;;  %606 = vmatprep.subr.mxu0 %v122_v6  ;;  %v105_v10 = vld [vmem:[%s1072_s1 + $0x268] sm:$0xff]  ;;  %v120_v12 = vld [vmem:[%s1072_s1 + $0x2e0] sm:$0xff]  ;;  %v694_v14 = vmov 0.0   ;;  %vm133_vm0 = vcmask 130048  }
  0x27   :  { %v125_v11 = vld [vmem:[%s1072_s1 + $0x308] sm:$0xff]  ;;  %607 = vmatpush3.msra.mxu0 %v106_v7  ;;  %341 = vmatprep.mubr.f32.mxu0 %v26_v8  ;;  %v104_v13 = vld [vmem:[%s1072_s1 + $0x260] sm:$0xff]  ;;  %v119_v16 = vld [vmem:[%s1072_s1 + $0x2d8] sm:$0xff]  ;;  %vm695_vm1 = vmmov 0   ;;  %vm438_vm2 = vcmask 1041408   ;;  %vm434_vm3 = vcmask 211968  }
  0x28   :  { %608 = vmatprep.subr.mxu0 %v121_v9  ;;  %647 = vmatprep.subr.mxu1 %v694_v14  ;;  %v124_v15 = vld [vmem:[%s1072_s1 + $0x300] sm:$0xff]  ;;  %v103_v17 = vld [vmem:[%s1072_s1 + $0x258] sm:$0xff]  ;;  %v27_v18 = vld [vmem:[%s1071_s0 + $0x30] sm:$0xff]  ;;  %vm512_vm4 = vcmask 80896  }
  0x29   :  { %609 = vmatpush3.msra.mxu0 %v105_v10  ;;  %648 = vmatpush3.msra.mxu1 %v125_v11  ;;  %v118_v19 = vld [vmem:[%s1072_s1 + $0x2d0] sm:$0xff]  ;;  %v117_v21 = vld [vmem:[%s1072_s1 + $0x2c8] sm:$0xff]  ;;  %v116_v23 = vld [vmem:[%s1072_s1 + $0x2c0] sm:$0xff] }
  0x2a   :  { %610 = vmatprep.subr.mxu0 %v120_v12  ;;  %649 = vmatprep.subr.mxu1 %v694_v14  ;;  %v102_v20 = vld [vmem:[%s1072_s1 + $0x250] sm:$0xff]  ;;  %v101_v22 = vld [vmem:[%s1072_s1 + $0x248] sm:$0xff]  ;;  %v100_v24 = vld [vmem:[%s1072_s1 + $0x240] sm:$0xff] }
  0x2b   :  { %611 = vmatpush3.msra.mxu0 %v104_v13  ;;  %650 = vmatpush3.msra.mxu1 %v124_v15  ;;  %v115_v25 = vld [vmem:[%s1072_s1 + $0x2b8] sm:$0xff]  ;;  %v114_v27 = vld [vmem:[%s1072_s1 + $0x2b0] sm:$0xff]  ;;  %v113_v29 = vld [vmem:[%s1072_s1 + $0x2a8] sm:$0xff] }
  0x2c   :  { %612 = vmatprep.subr.mxu0 %v119_v16  ;;  %651 = vmatprep.mubr.msk.f32.mxu1 %vm695_vm1, %v694_v14  ;;  %v99_v26 = vld [vmem:[%s1072_s1 + $0x238] sm:$0xff]  ;;  %v98_v28 = vld [vmem:[%s1072_s1 + $0x230] sm:$0xff]  ;;  %v97_v30 = vld [vmem:[%s1072_s1 + $0x228] sm:$0xff] }
  0x2d   :  { %613 = vmatpush3.msra.mxu0 %v103_v17  ;;  %652 = vmatmul.mubr.msk.f32.vlgmr.msra.gmra.mxu1 %vm133_vm0, %v27_v18  ;;  %v112_v31 = vld [vmem:[%s1072_s1 + $0x2a0] sm:$0xff]  ;;  %v111_v33 = vld [vmem:[%s1072_s1 + $0x298] sm:$0xff]  ;;  %v110_v35 = vld [vmem:[%s1072_s1 + $0x290] sm:$0xff] }
  0x2e   :  { %614 = vmatprep.subr.mxu0 %v118_v19  ;;  %654 = vmatprep.subr.mxu1 %v694_v14  ;;  %v96_v32 = vld [vmem:[%s1072_s1 + $0x220] sm:$0xff]  ;;  %v95_v34 = vld [vmem:[%s1072_s1 + $0x218] sm:$0xff]  ;;  %v94_v36 = vld [vmem:[%s1072_s1 + $0x210] sm:$0xff] }
  0x2f   :  { %615 = vmatpush3.msra.mxu0 %v102_v20  ;;  %662 = vmatprep.mubr.msk.f32.mxu1 %vm695_vm1, %v694_v14  ;;  %v109_v37 = vld [vmem:[%s1072_s1 + $0x288] sm:$0xff]  ;;  %v108_v39 = vld [vmem:[%s1072_s1 + $0x280] sm:$0xff]  ;;  %v426_v42 = vld [vmem:[%s1074_s3 + $0x18] sm:$0x3] }
  0x30   :  { %616 = vmatprep.subr.mxu0 %v117_v21  ;;  %v93_v38 = vld [vmem:[%s1072_s1 + $0x208] sm:$0xff]  ;;  %v92_v40 = vld [vmem:[%s1072_s1 + $0x200] sm:$0xff]  ;;  %v425_v43 = vld [vmem:[%s1074_s3 + $0x10] sm:$0xff]  ;;  %655 = vmatpush3.msk.msra.mxu1 %vm438_vm2, %v426_v42 }
  0x31   :  { %617 = vmatpush3.msra.mxu0 %v101_v22  ;;  %v25_v41 = vld [vmem:[%s1071_s0 + $0x20] sm:$0xff]  ;;  %656 = vmatprep.subr.mxu1 %v694_v14  ;;  %v424_v44 = vld [vmem:[%s1074_s3 + $0x8] sm:$0xff] }
  0x32   :  { %618 = vmatprep.subr.mxu0 %v116_v23  ;;  %657 = vmatpush3.msra.mxu1 %v425_v43  ;;  %v423_v45 = vld [vmem:[%s1074_s3] sm:$0xff] }
  0x33   :  { %619 = vmatpush3.msra.mxu0 %v100_v24  ;;  %658 = vmatprep.subr.mxu1 %v694_v14  ;;  %v528_v53 = vld [vmem:[%s1073_s2] ss:$0 sm:$0xff]  ;;  %s696_s2 = smov [#allocation2]  }
  0x34   :  { %620 = vmatprep.subr.mxu0 %v115_v25  ;;  %659 = vmatpush3.msra.mxu1 %v424_v44  ;;  %v531_v2 = vld [vmem:[%s1075_s4] ss:$0 sm:$0xff]  ;;  %s520_s12 = sshll.u32 %s696_s2, 4  ;;  %s521_s12 = int_to_ptr.vmem [resolvable:$true] %s520_s12 }
  0x35   :  { %621 = vmatpush3.msra.mxu0 %v99_v26  ;;  %660 = vmatprep.subr.mxu1 %v694_v14  ;;  %s672_s13 = scalar_lea.vmem %s521_s12, 128  ;;  %p677_p1 = scmp.lt.s32.totalorder %s521_s12, %s521_s12 }
  0x36   :  { %622 = vmatprep.subr.mxu0 %v114_v27  ;;  %661 = vmatpush3.msra.mxu1 %v423_v45  ;;  %p673_p0 = scmp.ne.s32.totalorder %s521_s12, %s672_s13  ;;  %p678_p2 = scmp.lt.s32.totalorder %s672_s13, %s672_s13 }
  0x37   :  { %623 = vmatpush3.msra.mxu0 %v98_v28 }
  0x38   :  { %624 = vmatprep.subr.mxu0 %v113_v29  ;;  %p679_p3 = por %p678_p2, %p677_p1 }
  0x39   :  { %625 = vmatpush3.msra.mxu0 %v97_v30 }
  0x3a   :  { %626 = vmatprep.subr.mxu0 %v112_v31  ;;  %p680_p4 = pnand %p679_p3, %p673_p0 }
  0x3b   :  { %627 = vmatpush3.msra.mxu0 %v96_v32 }
  0x3c   :  { %628 = vmatprep.subr.mxu0 %v111_v33 }
  0x3d   :  { %629 = vmatpush3.msra.mxu0 %v95_v34 }
  0x3e   :  { %630 = vmatprep.subr.mxu0 %v110_v35 }
  0x3f   :  { %631 = vmatpush3.msra.mxu0 %v94_v36 }
  0x40   :  { %632 = vmatprep.subr.mxu0 %v109_v37 }
  0x41   :  { %633 = vmatpush3.msra.mxu0 %v93_v38 }
  0x42   :  { %634 = vmatprep.subr.mxu0 %v108_v39 }
  0x43   :  { %635 = vmatpush3.msra.mxu0 %v92_v40 }
  0x44   :  { %342 = vmatmul.mubr.f32.vlgmr.msra.gmra.mxu0 %v25_v41 }
  0xe2   :  { %v566_v50 = vpop.f32.mrf.mxu0 }
  0xe4   :  { %v567_v51 = vpop.f32.mrf.mxu0 }
  0xe5   :  { %v568_v52 = vadd.f32 %v567_v51, %v566_v50 }
  0xe6   :  { %v601_v46 = vpop.f32.mrf.mxu1 }
  0xe7   :  { %v204_v54 = vadd.f32 %v568_v52, %v528_v53 }
  0xe8   :  { %v602_v47 = vpop.f32.mrf.mxu1 }
  0xe9   :  { %v603_v55 = vadd.f32 %v602_v47, %v601_v46 }
  0xeb   :  { %v274_v58 = vadd.f32 %v603_v55, %v204_v54 }
  0xed   :  { %v413_v48 = vpop.f32.mrf.mxu1 }
  0xef   :  { %v653_v49 = vpop.f32.mrf.mxu1 }
 0x104   :  { %v636_v56 = vpop.f32.mrf.mxu0 }
 0x106   :  { %v637_v57 = vpop.f32.mrf.mxu0 }
 0x107   :  { %v638_v59 = vadd.f32 %v637_v57, %v636_v56 }
 0x109   :  { %v344_v60 = vadd.f32 %v638_v59, %v274_v58 }
 0x10b   :  { %v414_v61 = vadd.f32 %v413_v48, %v344_v60 }
 0x10d   :  { %v530_v62 = vmul.f32 -1.442695, %v414_v61 }
 0x10f   :  { %668 = vpow2.f32 %v530_v62 }
 0x11c   :  { %v669_v63 = vpop.eup %668 }
 0x11d   :  { %v420_v0 = vadd.f32 1.0, %v669_v63 }
 0x11f   :  { %670 = vrcp.f32 %v420_v0 }
 0x12c   :  { %v671_v1 = vpop.eup %670 }
 0x12d   :  { %663 = vmatmul.mubr.msk.f32.vlgmr.msra.gmra.mxu1 %vm434_vm3, %v671_v1 }
 0x1ed   :  { %v508_v3 = vpop.f32.mrf.mxu1 }
 0x1ee   :  { %v509_v4 = vadd.f32 %v531_v2, %v508_v3 }
 0x1ef   :  { %v664_v5 = vpop.f32.mrf.mxu1 }
 0x1f0   :  { %513 = vst.msk [vmem:[#allocation2] sm:$0xff] %vm512_vm4, %v509_v4 }
 0x1f1   :  { %683 = shalt.err (!%p680_p4)
}
 0x1f2   :  { %523 = dma.vmem_to_hbm [thread:$0]  %s521_s12, 128, %s1076_s5, [#allocation3]  }
 0x1f3   :  { %692 = dma.done.wait [#allocation3], 128  }
 0x1f4   :  { %693 = vsyncadd [#allocation3], 4294967168 }
 0x1f5   :  { %527 = vsyncpa [#allocation3], 1 }

</bundles_post_ra>
